<compile_context>
chip_gen: v5e
topology: v5e:2x2
jax: 0.10.0
libtpu: 0.0.40
codegen_flags: <defaults>
</compile_context>

<pallas_src>
from functools import partial

import jax
import jax.numpy as jnp
from jax.experimental import pallas as pl
from jax.experimental.pallas import tpu as pltpu


def _linear_lane_dense_kernel(p_ref, x_ref, o_ref):
    """y[o, :] = bias[o] + sum_k w[k, o] * x[k, :]   (batch on lanes).

    p_ref: SMEM (IN+1, OUT) f32 -- packed params, row IN holds the bias.
    x_ref: VMEM (IN, TB)        -- input tile, batch on the lane axis.
    o_ref: VMEM (OUT, TB)       -- output tile, batch on the lane axis.
    """
    in_dim = x_ref.shape[0]
    out_dim = o_ref.shape[0]
    x = x_ref[...].astype(jnp.float32)                    # (IN, TB) in f32
    for o in range(out_dim):                              # OUT = 3: fully unrolled
        # bias[o] + w[0, o] * x[0, :]  (scalar-from-SMEM x vreg FMAs on the VPU)
        acc = p_ref[in_dim, o] + p_ref[0, o] * x[0:1, :]
        for k in range(1, in_dim):
            acc = acc + p_ref[k, o] * x[k:k + 1, :]
        o_ref[o:o + 1, :] = acc.astype(o_ref.dtype)       # lane-dense row store


def _choose_tb(batch):
    """Lane-tile size: multiple of 128, capped at 2048 lanes."""
    b128 = ((batch + 127) // 128) * 128
    return min(2048, b128)


@partial(jax.jit, static_argnames=("tb",))
def generator_forward_lane_dense(x_t, params, tb=None):
    """Lane-dense forward: x_t is (IN, B); returns (OUT, B)."""
    in_dim, batch = x_t.shape
    out_dim = params.shape[1]
    if tb is None:
        tb = _choose_tb(batch)
    b_pad = pl.cdiv(batch, tb) * tb
    x_p = jnp.pad(x_t, ((0, 0), (0, b_pad - batch)))

    y_p = pl.pallas_call(
        _linear_lane_dense_kernel,
        out_shape=jax.ShapeDtypeStruct((out_dim, b_pad), x_t.dtype),
        grid=(b_pad // tb,),
        in_specs=[
            pl.BlockSpec(memory_space=pltpu.MemorySpace.SMEM),   # packed (IN+1, OUT) params
            pl.BlockSpec((in_dim, tb), lambda i: (0, i)),        # x tile, batch on lanes
        ],
        out_specs=pl.BlockSpec((out_dim, tb), lambda i: (0, i)),
        compiler_params=pltpu.CompilerParams(
            dimension_semantics=("parallel",)),                  # shard batch over v7x's 2 TCs
    )(params, x_p)
    return y_p[:, :batch]


@partial(jax.jit, static_argnames=("tb",))
def generator_forward(x, params, tb=None):
    """PyTorch-compatible forward (== Generator.forward): x is (B, IN) -> (B, OUT).

    Transposes only at the boundary; performance-critical callers should feed
    (IN, B) directly via generator_forward_lane_dense (or fuse upstream).
    """
    return generator_forward_lane_dense(x.T, params, tb=tb).T


def init_generator_params(key, input_dim, output_dim):
    """Mimics PyTorch nn.Linear default init; packs params once in kernel layout."""
    kw, kb = jax.random.split(key, 2)
    bound = 1.0 / (input_dim ** 0.5)
    weight = jax.random.uniform(kw, (output_dim, input_dim), jnp.float32,
                                minval=-bound, maxval=bound)     # PyTorch (OUT, IN)
    bias = jax.random.uniform(kb, (output_dim,), jnp.float32,
                              minval=-bound, maxval=bound)       # (OUT,)
    # Packed kernel layout built once at init: (IN+1, OUT), row IN = bias.
    params = jnp.concatenate([weight.T, bias[None, :]], axis=0)
    return weight, bias, params


if __name__ == "__main__":
    input_dim = 3
    output_dim = 3

    key = jax.random.PRNGKey(0)
    kx1, kx2, kparams = jax.random.split(key, 3)
    weight, bias, params = init_generator_params(kparams, input_dim, output_dim)

    # Small PyTorch-shaped input (B, IN), like Generator.forward(x).
    batch = 8
    x = jax.random.normal(kx1, (batch, input_dim), jnp.float32)
    y = generator_forward(x, params)
    jax.block_until_ready(y)
    y_ref = x @ weight.T + bias
    assert y.shape == (batch, output_dim)
    assert jnp.allclose(y, y_ref, atol=1e-5, rtol=1e-5)

    # Larger lane-dense batch exercising the 1-D batch grid (3 tiles of 128 lanes).
    big_batch = 300
    x_big_t = jax.random.normal(kx2, (input_dim, big_batch), jnp.float32)
    y_big_t = generator_forward_lane_dense(x_big_t, params, tb=128)
    jax.block_until_ready(y_big_t)
    y_big_ref = x_big_t.T @ weight.T + bias
    assert y_big_t.shape == (output_dim, big_batch)
    assert jnp.allclose(y_big_t.T, y_big_ref, atol=1e-5, rtol=1e-5)

    print("KERNEL_OK")
</pallas_src>

<mosaic_0001>
module attributes {stable_mosaic.version = 11 : i64} {
  func.func @_linear_lane_dense_kernel(%arg0: i32, %arg1: memref<4x3xf32, #tpu.memory_space<smem>>, %arg2: memref<3x128xf32, #tpu.memory_space<vmem>>, %arg3: memref<3x128xf32, #tpu.memory_space<vmem>>) attributes {dimension_semantics = [#tpu.dimension_semantics<parallel>], iteration_bounds = array<i64: 1>, scalar_prefetch = 0 : i64, scratch_operands = 0 : i64, tpu.core_type = #tpu.core_type<tc>, window_params = [{transform_indices = @transform_0, window_bounds = array<i64: 4, 3>}, {transform_indices = @transform_1, window_bounds = array<i64: 3, 128>}, {transform_indices = @transform_2, window_bounds = array<i64: 3, 128>}]} {
    %c0 = arith.constant 0 : index
    %c0_0 = arith.constant 0 : index
    %0 = vector.load %arg2[%c0, %c0_0] : memref<3x128xf32, #tpu.memory_space<vmem>>, vector<3x128xf32>
    %c3 = arith.constant 3 : index
    %c0_1 = arith.constant 0 : index
    %1 = memref.load %arg1[%c3, %c0_1] : memref<4x3xf32, #tpu.memory_space<smem>>
    %c0_2 = arith.constant 0 : index
    %c0_3 = arith.constant 0 : index
    %2 = memref.load %arg1[%c0_2, %c0_3] : memref<4x3xf32, #tpu.memory_space<smem>>
    %3 = vector.extract_strided_slice %0 {offsets = [0, 0], sizes = [1, 128], strides = [1, 1]} : vector<3x128xf32> to vector<1x128xf32>
    %4 = vector.broadcast %2 : f32 to vector<1x128xf32>
    %5 = arith.mulf %4, %3 : vector<1x128xf32>
    %6 = vector.broadcast %1 : f32 to vector<1x128xf32>
    %7 = arith.addf %6, %5 : vector<1x128xf32>
    %c1 = arith.constant 1 : index
    %c0_4 = arith.constant 0 : index
    %8 = memref.load %arg1[%c1, %c0_4] : memref<4x3xf32, #tpu.memory_space<smem>>
    %9 = vector.extract_strided_slice %0 {offsets = [1, 0], sizes = [1, 128], strides = [1, 1]} : vector<3x128xf32> to vector<1x128xf32>
    %10 = vector.broadcast %8 : f32 to vector<1x128xf32>
    %11 = arith.mulf %10, %9 : vector<1x128xf32>
    %12 = arith.addf %7, %11 : vector<1x128xf32>
    %c2 = arith.constant 2 : index
    %c0_5 = arith.constant 0 : index
    %13 = memref.load %arg1[%c2, %c0_5] : memref<4x3xf32, #tpu.memory_space<smem>>
    %14 = vector.extract_strided_slice %0 {offsets = [2, 0], sizes = [1, 128], strides = [1, 1]} : vector<3x128xf32> to vector<1x128xf32>
    %15 = vector.broadcast %13 : f32 to vector<1x128xf32>
    %16 = arith.mulf %15, %14 : vector<1x128xf32>
    %17 = arith.addf %12, %16 : vector<1x128xf32>
    %c0_6 = arith.constant 0 : index
    %c0_7 = arith.constant 0 : index
    %18 = vector.load %arg3[%c0_6, %c0_7] : memref<3x128xf32, #tpu.memory_space<vmem>>, vector<1x128xf32>
    tpu.vector_store %arg3[%c0_6, %c0_7], %17 {strides = array<i32>} : memref<3x128xf32, #tpu.memory_space<vmem>>, vector<1x128xf32>,
    %c3_8 = arith.constant 3 : index
    %c1_9 = arith.constant 1 : index
    %19 = memref.load %arg1[%c3_8, %c1_9] : memref<4x3xf32, #tpu.memory_space<smem>>
    %c0_10 = arith.constant 0 : index
    %c1_11 = arith.constant 1 : index
    %20 = memref.load %arg1[%c0_10, %c1_11] : memref<4x3xf32, #tpu.memory_space<smem>>
    %21 = vector.extract_strided_slice %0 {offsets = [0, 0], sizes = [1, 128], strides = [1, 1]} : vector<3x128xf32> to vector<1x128xf32>
    %22 = vector.broadcast %20 : f32 to vector<1x128xf32>
    %23 = arith.mulf %22, %21 : vector<1x128xf32>
    %24 = vector.broadcast %19 : f32 to vector<1x128xf32>
    %25 = arith.addf %24, %23 : vector<1x128xf32>
    %c1_12 = arith.constant 1 : index
    %c1_13 = arith.constant 1 : index
    %26 = memref.load %arg1[%c1_12, %c1_13] : memref<4x3xf32, #tpu.memory_space<smem>>
    %27 = vector.extract_strided_slice %0 {offsets = [1, 0], sizes = [1, 128], strides = [1, 1]} : vector<3x128xf32> to vector<1x128xf32>
    %28 = vector.broadcast %26 : f32 to vector<1x128xf32>
    %29 = arith.mulf %28, %27 : vector<1x128xf32>
    %30 = arith.addf %25, %29 : vector<1x128xf32>
    %c2_14 = arith.constant 2 : index
    %c1_15 = arith.constant 1 : index
    %31 = memref.load %arg1[%c2_14, %c1_15] : memref<4x3xf32, #tpu.memory_space<smem>>
    %32 = vector.extract_strided_slice %0 {offsets = [2, 0], sizes = [1, 128], strides = [1, 1]} : vector<3x128xf32> to vector<1x128xf32>
    %33 = vector.broadcast %31 : f32 to vector<1x128xf32>
    %34 = arith.mulf %33, %32 : vector<1x128xf32>
    %35 = arith.addf %30, %34 : vector<1x128xf32>
    %c1_16 = arith.constant 1 : index
    %c0_17 = arith.constant 0 : index
    %36 = vector.load %arg3[%c1_16, %c0_17] : memref<3x128xf32, #tpu.memory_space<vmem>>, vector<1x128xf32>
    tpu.vector_store %arg3[%c1_16, %c0_17], %35 {strides = array<i32>} : memref<3x128xf32, #tpu.memory_space<vmem>>, vector<1x128xf32>,
    %c3_18 = arith.constant 3 : index
    %c2_19 = arith.constant 2 : index
    %37 = memref.load %arg1[%c3_18, %c2_19] : memref<4x3xf32, #tpu.memory_space<smem>>
    %c0_20 = arith.constant 0 : index
    %c2_21 = arith.constant 2 : index
    %38 = memref.load %arg1[%c0_20, %c2_21] : memref<4x3xf32, #tpu.memory_space<smem>>
    %39 = vector.extract_strided_slice %0 {offsets = [0, 0], sizes = [1, 128], strides = [1, 1]} : vector<3x128xf32> to vector<1x128xf32>
    %40 = vector.broadcast %38 : f32 to vector<1x128xf32>
    %41 = arith.mulf %40, %39 : vector<1x128xf32>
    %42 = vector.broadcast %37 : f32 to vector<1x128xf32>
    %43 = arith.addf %42, %41 : vector<1x128xf32>
    %c1_22 = arith.constant 1 : index
    %c2_23 = arith.constant 2 : index
    %44 = memref.load %arg1[%c1_22, %c2_23] : memref<4x3xf32, #tpu.memory_space<smem>>
    %45 = vector.extract_strided_slice %0 {offsets = [1, 0], sizes = [1, 128], strides = [1, 1]} : vector<3x128xf32> to vector<1x128xf32>
    %46 = vector.broadcast %44 : f32 to vector<1x128xf32>
    %47 = arith.mulf %46, %45 : vector<1x128xf32>
    %48 = arith.addf %43, %47 : vector<1x128xf32>
    %c2_24 = arith.constant 2 : index
    %c2_25 = arith.constant 2 : index
    %49 = memref.load %arg1[%c2_24, %c2_25] : memref<4x3xf32, #tpu.memory_space<smem>>
    %50 = vector.extract_strided_slice %0 {offsets = [2, 0], sizes = [1, 128], strides = [1, 1]} : vector<3x128xf32> to vector<1x128xf32>
    %51 = vector.broadcast %49 : f32 to vector<1x128xf32>
    %52 = arith.mulf %51, %50 : vector<1x128xf32>
    %53 = arith.addf %48, %52 : vector<1x128xf32>
    %c2_26 = arith.constant 2 : index
    %c0_27 = arith.constant 0 : index
    %54 = vector.load %arg3[%c2_26, %c0_27] : memref<3x128xf32, #tpu.memory_space<vmem>>, vector<1x128xf32>
    tpu.vector_store %arg3[%c2_26, %c0_27], %53 {strides = array<i32>} : memref<3x128xf32, #tpu.memory_space<vmem>>, vector<1x128xf32>,
    return
  }
  func.func @transform_0(%arg0: i32) -> (i32, i32) {
    %c0_i32 = arith.constant 0 : i32
    %c0_i32_0 = arith.constant 0 : i32
    %c0_i32_1 = arith.constant 0 : i32
    return %c0_i32, %c0_i32_0 : i32, i32
  }
  func.func @transform_1(%arg0: i32) -> (i32, i32) {
    %c0_i32 = arith.constant 0 : i32
    %c0_i32_0 = arith.constant 0 : i32
    return %c0_i32, %arg0 : i32, i32
  }
  func.func @transform_2(%arg0: i32) -> (i32, i32) {
    %c0_i32 = arith.constant 0 : i32
    %c0_i32_0 = arith.constant 0 : i32
    return %c0_i32, %arg0 : i32, i32
  }
}

</mosaic_0001>

<bundles_post_ra>
// kernel: generator_forward_lane_dense.1
= control target key start
LH: loop header
LB: loop body
LE: loop exit
PB: predicated region body
PF: predicated region fallthrough
CT: control target
= control target key end

     0   :  { %7 = vsyncpa [#allocation4], 0  ;;  %s188_s0 = inlined_call_operand.vmem [shape: f32[4,3], index: 0, kind: input, shape index: {}]   ;;  %s189_s1 = inlined_call_operand.vmem [shape: f32[3,128], index: 1, kind: input, shape index: {}]   ;;  %s190_s2 = inlined_call_operand.hbm [shape: f32[3,128], index: 2, kind: output, shape index: {}]  }
   0x1   :  { %8 = vsyncpa [#allocation3], 0  ;;  %s14_s11 = sshll.u32 %s188_s0, 4  ;;  %s159_s12 = smov [#allocation2]   ;;  %s15_s11 = int_to_ptr.vmem [resolvable:$true] %s14_s11 }
   0x2   :  { %17 = dma.vmem_to_smem %s15_s11, 64, %s159_s12, [#allocation4]  }
   0x3   :  { %155 = dma.done.wait [#allocation4], 64  }
   0x4   :  { %156 = vsyncadd [#allocation4], 4294967232 }
   0x5   :  { %24 = sfence }
   0x6   :  { %s106_s13 = sld [smem:[#allocation2 + $0x180]]  ;;  %v25_v0 = vld [vmem:[%s189_s1] sm:$0x7]  ;;  %s160_s25 = smov [#allocation5]  }
   0x7   :  { %s27_s14 = sld [smem:[#allocation2]]  ;;  %s94_s26 = sshll.u32 %s160_s25, 4  ;;  %s95_s26 = int_to_ptr.vmem [resolvable:$true] %s94_s26 }
   0x8   :  { %s107_s15 = sld [smem:[#allocation2 + $0x80]]  ;;  %s96_s29 = sshll.u32 %s190_s2, 4  ;;  %s97_s29 = int_to_ptr.hbm [resolvable:$true] %s96_s29 }
   0x9   :  { %s108_s16 = sld [smem:[#allocation2 + $0x100]] }
   0xa   :  { %s109_s17 = sld [smem:[#allocation2 + $0x181]] }
   0xb   :  { %s110_s20 = sld [smem:[#allocation2 + $0x1]] }
   0xc   :  { %s111_s21 = sld [smem:[#allocation2 + $0x81]]  ;;  %v30_v2 = vstv %s106_s13 }
   0xd   :  { %v28_v1 = vstv %s27_s14  ;;  %s112_s0 = sld [smem:[#allocation2 + $0x101]] }
   0xe   :  { %v29_v3 = vmul.f32 %v28_v1, %v25_v0  ;;  %v33_v4 = vstv %s107_s15  ;;  %s182_s22 = sld [smem:[#allocation2 + $0x182]] }
   0xf   :  { %v34_v5 = vmul.f32 %v33_v4, %v25_v0  ;;  %v40_v6 = vstv %s108_s16  ;;  %s114_s23 = sld [smem:[#allocation2 + $0x2]] }
  0x10   :  { %v31_v7 = vadd.f32 %v30_v2, %v29_v3  ;;  %v41_v8 = vmul.f32 %v40_v6, %v25_v0  ;;  %s115_s24 = sld [smem:[#allocation2 + $0x82]]  ;;  %v51_v11 = vstv %s109_s17 }
  0x11   :  { %v36_v9 = vrot.slane %v34_v5, 1  ;;  %v49_v10 = vstv %s110_s20  ;;  %s116_s1 = sld [smem:[#allocation2 + $0x102]] }
  0x12   :  { %v43_v12 = vrot.slane %v41_v8, 2  ;;  %v50_v13 = vmul.f32 %v49_v10, %v25_v0  ;;  %v54_v14 = vstv %s111_s21 }
  0x13   :  { %v38_v15 = vadd.f32 %v36_v9, %v31_v7  ;;  %v55_v16 = vmul.f32 %v54_v14, %v25_v0  ;;  %v61_v17 = vstv %s112_s0 }
  0x14   :  { %v52_v18 = vadd.f32 %v51_v11, %v50_v13  ;;  %v62_v19 = vmul.f32 %v61_v17, %v25_v0  ;;  %v72_v23 = vstv %s182_s22 }
  0x15   :  { %v45_v20 = vadd.f32 %v43_v12, %v38_v15  ;;  %v57_v21 = vrot.slane %v55_v16, 1  ;;  %v70_v22 = vstv %s114_s23 }
  0x16   :  { %v64_v24 = vrot.slane %v62_v19, 2  ;;  %v71_v25 = vmul.f32 %v70_v22, %v25_v0  ;;  %v75_v26 = vstv %s115_s24 }
  0x17   :  { %46 = vst [vmem:[#allocation5] sm:$0x1] %v45_v20  ;;  %v59_v27 = vadd.f32 %v57_v21, %v52_v18  ;;  %v76_v28 = vmul.f32 %v75_v26, %v25_v0  ;;  %v82_v29 = vstv %s116_s1 }
  0x18   :  { %v73_v30 = vadd.f32 %v72_v23, %v71_v25  ;;  %v83_v31 = vmul.f32 %v82_v29, %v25_v0 }
  0x19   :  { %v66_v32 = vadd.f32 %v64_v24, %v59_v27  ;;  %v78_v33 = vrot.slane %v76_v28, 1 }
  0x1a   :  { %v85_v34 = vrot.slane %v83_v31, 2 }
  0x1b   :  { %67 = vst [vmem:[#allocation5 + $0x1] sm:$0x1] %v66_v32  ;;  %v80_v35 = vadd.f32 %v78_v33, %v73_v30 }
  0x1d   :  { %v87_v36 = vadd.f32 %v85_v34, %v80_v35 }
  0x1f   :  { %88 = vst [vmem:[#allocation5 + $0x2] sm:$0x1] %v87_v36 }
  0x20   :  { %99 = dma.vmem_to_hbm [thread:$0]  %s95_s26, 64, %s97_s29, [#allocation3]  }
  0x21   :  { %157 = dma.done.wait [#allocation3], 64  }
  0x22   :  { %158 = vsyncadd [#allocation3], 4294967232 }
  0x23   :  { %104 = vsyncpa [#allocation3], 1 }
  0x24   :  { %105 = vsyncpa [#allocation4], 1 }

</bundles_post_ra>
